<compile_context>
chip_gen: v5e
topology: v5e:2x2
jax: 0.10.0
libtpu: 0.0.40
codegen_flags: <defaults>
</compile_context>

<pallas_src>
import jax
import jax.numpy as jnp
from jax.experimental import pallas as pl
from jax.experimental.pallas import tpu as pltpu


def _round_up(x, m):
    return (x + m - 1) // m * m


def _mlp_kernel(xT_ref, w0_ref, b0_ref, w1_ref, b1_ref, w2_ref, b2_ref, o_ref):
    """Fused 3-layer MLP on a lane-dense [C, TILE_N] tile.

    xT_ref : [dim_in,  TILE_N]  bf16   (batch on lanes)
    w*_ref : [C_out,   C_in]    bf16   (torch Linear layout)
    b*_ref : [C_out,   1]       f32
    o_ref  : [dim_out, TILE_N]  f32
    """
    x = xT_ref[...]

    # Layer 0: BasicBlock (Linear + ReLU), bf16 MXU, f32 accumulate.
    h = jnp.dot(w0_ref[...], x, preferred_element_type=jnp.float32)
    h = jnp.maximum(h + b0_ref[...], 0.0)

    # Layer 1: BasicBlock (Linear + ReLU).
    h = jnp.dot(w1_ref[...], h.astype(w1_ref.dtype),
                preferred_element_type=jnp.float32)
    h = jnp.maximum(h + b1_ref[...], 0.0)

    # Layer 2: final Linear (no activation).
    y = jnp.dot(w2_ref[...], h.astype(w2_ref.dtype),
                preferred_element_type=jnp.float32)
    o_ref[...] = (y + b2_ref[...]).astype(o_ref.dtype)


def mlp_forward(x, params, *, tile_n=4096):
    """x: [N, dim_in] float32. params = (w0, b0, w1, b1, w2, b2) in torch
    nn.Linear layout (w: [C_out, C_in], b: [C_out])."""
    w0, b0, w1, b1, w2, b2 = params
    n, dim_in = x.shape
    dim_hidden = w0.shape[0]
    dim_out = w2.shape[0]

    # Batch tiling: lane-dense tiles of TILE_N points (multiple of 128).
    tile = min(tile_n, _round_up(max(n, 1), 128))
    n_pad = _round_up(max(n, 1), tile)
    grid = (n_pad // tile,)

    # Wrapper-side layout plumbing: pad N, cast to bf16, put batch on lanes.
    x_p = jnp.pad(x, ((0, n_pad - n), (0, 0)))
    xT = x_p.astype(jnp.bfloat16).T                      # [dim_in, n_pad]
    w0b = w0.astype(jnp.bfloat16)
    w1b = w1.astype(jnp.bfloat16)
    w2b = w2.astype(jnp.bfloat16)
    b0c = b0.astype(jnp.float32).reshape(dim_hidden, 1)
    b1c = b1.astype(jnp.float32).reshape(dim_hidden, 1)
    b2c = b2.astype(jnp.float32).reshape(dim_out, 1)

    flops = 2 * n_pad * (dim_in * dim_hidden
                         + dim_hidden * dim_hidden
                         + dim_hidden * dim_out)
    bytes_accessed = (n_pad * dim_in * 2 + n_pad * dim_out * 4
                      + (dim_in * dim_hidden + dim_hidden * dim_hidden
                         + dim_hidden * dim_out) * 2
                      + (2 * dim_hidden + dim_out) * 4)

    yT = pl.pallas_call(
        _mlp_kernel,
        out_shape=jax.ShapeDtypeStruct((dim_out, n_pad), jnp.float32),
        grid=grid,
        in_specs=[
            # Activations: tiled along the (lane) batch axis.
            pl.BlockSpec((dim_in, tile), lambda i: (0, i)),
            # Weights / biases: full blocks, constant index_map -> VMEM-resident.
            pl.BlockSpec((dim_hidden, dim_in), lambda i: (0, 0)),
            pl.BlockSpec((dim_hidden, 1), lambda i: (0, 0)),
            pl.BlockSpec((dim_hidden, dim_hidden), lambda i: (0, 0)),
            pl.BlockSpec((dim_hidden, 1), lambda i: (0, 0)),
            pl.BlockSpec((dim_out, dim_hidden), lambda i: (0, 0)),
            pl.BlockSpec((dim_out, 1), lambda i: (0, 0)),
        ],
        out_specs=pl.BlockSpec((dim_out, tile), lambda i: (0, i)),
        compiler_params=pltpu.CompilerParams(
            dimension_semantics=("parallel",),
        ),
        cost_estimate=pl.CostEstimate(
            flops=flops, transcendentals=0, bytes_accessed=bytes_accessed),
    )(xT, w0b, b0c, w1b, b1c, w2b, b2c)

    # Back to [N, dim_out] in the caller's layout / dtype.
    return yT.T[:n].astype(x.dtype)


def init_mlp_params(key, dim_in, dim_hidden, dim_out):
    """Deterministic init mimicking nn.Linear default (uniform +/- 1/sqrt(fan_in)).
    Weights are in torch layout [C_out, C_in]."""
    def linear(k, fan_in, fan_out):
        kw, kb = jax.random.split(k)
        bound = 1.0 / jnp.sqrt(fan_in)
        w = jax.random.uniform(kw, (fan_out, fan_in), jnp.float32, -bound, bound)
        b = jax.random.uniform(kb, (fan_out,), jnp.float32, -bound, bound)
        return w, b

    k0, k1, k2 = jax.random.split(key, 3)
    w0, b0 = linear(k0, dim_in, dim_hidden)
    w1, b1 = linear(k1, dim_hidden, dim_hidden)
    w2, b2 = linear(k2, dim_hidden, dim_out)
    return (w0, b0, w1, b1, w2, b2)


def mlp_reference(x, params):
    w0, b0, w1, b1, w2, b2 = params
    h = jnp.maximum(x @ w0.T + b0, 0.0)
    h = jnp.maximum(h @ w1.T + b1, 0.0)
    return h @ w2.T + b2


if __name__ == "__main__":
    # Shapes consistent with a deformation MLP: dim_in=4, hidden=32, dim_out=3,
    # num_layers=3, batch of 16 points.
    dim_in, dim_hidden, dim_out = 4, 32, 3
    n = 16

    key = jax.random.PRNGKey(0)
    kx, kp = jax.random.split(key)
    x = jax.random.normal(kx, (n, dim_in), dtype=jnp.float32)
    params = init_mlp_params(kp, dim_in, dim_hidden, dim_out)

    out = mlp_forward(x, params)
    out = jax.block_until_ready(out)

    ref = mlp_reference(x, params)
    assert out.shape == (n, dim_out)
    # bf16 weights/activations with f32 accumulation -> relaxed tolerance.
    assert jnp.allclose(out, ref, atol=2e-2, rtol=2e-2)

    print("KERNEL_OK")
</pallas_src>

<mosaic_0001>
module attributes {stable_mosaic.version = 11 : i64} {
  func.func @_mlp_kernel(%arg0: i32, %arg1: memref<4x128xbf16, #tpu.memory_space<vmem>>, %arg2: memref<32x4xbf16, #tpu.memory_space<vmem>>, %arg3: memref<32x1xf32, #tpu.memory_space<vmem>>, %arg4: memref<32x32xbf16, #tpu.memory_space<vmem>>, %arg5: memref<32x1xf32, #tpu.memory_space<vmem>>, %arg6: memref<3x32xbf16, #tpu.memory_space<vmem>>, %arg7: memref<3x1xf32, #tpu.memory_space<vmem>>, %arg8: memref<3x128xf32, #tpu.memory_space<vmem>>) attributes {dimension_semantics = [#tpu.dimension_semantics<parallel>], iteration_bounds = array<i64: 1>, scalar_prefetch = 0 : i64, scratch_operands = 0 : i64, tpu.core_type = #tpu.core_type<tc>, window_params = [{transform_indices = @transform_0, window_bounds = array<i64: 4, 128>}, {pipeline_mode = #tpu.pipeline_mode<synchronous>, transform_indices = @transform_1, window_bounds = array<i64: 32, 4>}, {pipeline_mode = #tpu.pipeline_mode<synchronous>, transform_indices = @transform_2, window_bounds = array<i64: 32, 1>}, {pipeline_mode = #tpu.pipeline_mode<synchronous>, transform_indices = @transform_3, window_bounds = array<i64: 32, 32>}, {pipeline_mode = #tpu.pipeline_mode<synchronous>, transform_indices = @transform_4, window_bounds = array<i64: 32, 1>}, {pipeline_mode = #tpu.pipeline_mode<synchronous>, transform_indices = @transform_5, window_bounds = array<i64: 3, 32>}, {pipeline_mode = #tpu.pipeline_mode<synchronous>, transform_indices = @transform_6, window_bounds = array<i64: 3, 1>}, {transform_indices = @transform_7, window_bounds = array<i64: 3, 128>}]} {
    %c0 = arith.constant 0 : index
    %c0_0 = arith.constant 0 : index
    %0 = vector.load %arg1[%c0, %c0_0] : memref<4x128xbf16, #tpu.memory_space<vmem>>, vector<4x128xbf16>
    %c0_1 = arith.constant 0 : index
    %c0_2 = arith.constant 0 : index
    %1 = vector.load %arg2[%c0_1, %c0_2] : memref<32x4xbf16, #tpu.memory_space<vmem>>, vector<32x4xbf16>
    %cst = arith.constant dense<0.000000e+00> : vector<32x128xf32>
    %2 = tpu.matmul %1, %0, %cst {dimension_numbers = #tpu.dot_dimension_numbers<[1], [0], [0], [1], [0, 0, 1, 1], [], []>} : vector<32x4xbf16>, vector<4x128xbf16>, vector<32x128xf32> -> vector<32x128xf32>
    %c0_3 = arith.constant 0 : index
    %c0_4 = arith.constant 0 : index
    %3 = vector.load %arg3[%c0_3, %c0_4] : memref<32x1xf32, #tpu.memory_space<vmem>>, vector<32x1xf32>
    %4 = vector.broadcast %3 : vector<32x1xf32> to vector<32x128xf32>
    %5 = arith.addf %2, %4 : vector<32x128xf32>
    %cst_5 = arith.constant 0.000000e+00 : f32
    %6 = vector.broadcast %cst_5 : f32 to vector<32x128xf32>
    %7 = arith.maximumf %5, %6 : vector<32x128xf32>
    %c0_6 = arith.constant 0 : index
    %c0_7 = arith.constant 0 : index
    %8 = vector.load %arg4[%c0_6, %c0_7] : memref<32x32xbf16, #tpu.memory_space<vmem>>, vector<32x32xbf16>
    %9 = arith.truncf %7 : vector<32x128xf32> to vector<32x128xbf16>
    %cst_8 = arith.constant dense<0.000000e+00> : vector<32x128xf32>
    %10 = tpu.matmul %8, %9, %cst_8 {dimension_numbers = #tpu.dot_dimension_numbers<[1], [0], [0], [1], [0, 0, 1, 1], [], []>} : vector<32x32xbf16>, vector<32x128xbf16>, vector<32x128xf32> -> vector<32x128xf32>
    %c0_9 = arith.constant 0 : index
    %c0_10 = arith.constant 0 : index
    %11 = vector.load %arg5[%c0_9, %c0_10] : memref<32x1xf32, #tpu.memory_space<vmem>>, vector<32x1xf32>
    %12 = vector.broadcast %11 : vector<32x1xf32> to vector<32x128xf32>
    %13 = arith.addf %10, %12 : vector<32x128xf32>
    %cst_11 = arith.constant 0.000000e+00 : f32
    %14 = vector.broadcast %cst_11 : f32 to vector<32x128xf32>
    %15 = arith.maximumf %13, %14 : vector<32x128xf32>
    %c0_12 = arith.constant 0 : index
    %c0_13 = arith.constant 0 : index
    %16 = vector.load %arg6[%c0_12, %c0_13] : memref<3x32xbf16, #tpu.memory_space<vmem>>, vector<3x32xbf16>
    %17 = arith.truncf %15 : vector<32x128xf32> to vector<32x128xbf16>
    %cst_14 = arith.constant dense<0.000000e+00> : vector<3x128xf32>
    %18 = tpu.matmul %16, %17, %cst_14 {dimension_numbers = #tpu.dot_dimension_numbers<[1], [0], [0], [1], [0, 0, 1, 1], [], []>} : vector<3x32xbf16>, vector<32x128xbf16>, vector<3x128xf32> -> vector<3x128xf32>
    %c0_15 = arith.constant 0 : index
    %c0_16 = arith.constant 0 : index
    %19 = vector.load %arg7[%c0_15, %c0_16] : memref<3x1xf32, #tpu.memory_space<vmem>>, vector<3x1xf32>
    %20 = vector.broadcast %19 : vector<3x1xf32> to vector<3x128xf32>
    %21 = arith.addf %18, %20 : vector<3x128xf32>
    %c0_17 = arith.constant 0 : index
    %c0_18 = arith.constant 0 : index
    %22 = vector.load %arg8[%c0_17, %c0_18] : memref<3x128xf32, #tpu.memory_space<vmem>>, vector<3x128xf32>
    tpu.vector_store %arg8[%c0_17, %c0_18], %21 {strides = array<i32>} : memref<3x128xf32, #tpu.memory_space<vmem>>, vector<3x128xf32>,
    return
  }
  func.func @transform_0(%arg0: i32) -> (i32, i32) {
    %c0_i32 = arith.constant 0 : i32
    %c0_i32_0 = arith.constant 0 : i32
    return %c0_i32, %arg0 : i32, i32
  }
  func.func @transform_1(%arg0: i32) -> (i32, i32) {
    %c0_i32 = arith.constant 0 : i32
    %c0_i32_0 = arith.constant 0 : i32
    %c0_i32_1 = arith.constant 0 : i32
    return %c0_i32, %c0_i32_0 : i32, i32
  }
  func.func @transform_2(%arg0: i32) -> (i32, i32) {
    %c0_i32 = arith.constant 0 : i32
    %c0_i32_0 = arith.constant 0 : i32
    %c0_i32_1 = arith.constant 0 : i32
    return %c0_i32, %c0_i32_0 : i32, i32
  }
  func.func @transform_3(%arg0: i32) -> (i32, i32) {
    %c0_i32 = arith.constant 0 : i32
    %c0_i32_0 = arith.constant 0 : i32
    %c0_i32_1 = arith.constant 0 : i32
    return %c0_i32, %c0_i32_0 : i32, i32
  }
  func.func @transform_4(%arg0: i32) -> (i32, i32) {
    %c0_i32 = arith.constant 0 : i32
    %c0_i32_0 = arith.constant 0 : i32
    %c0_i32_1 = arith.constant 0 : i32
    return %c0_i32, %c0_i32_0 : i32, i32
  }
  func.func @transform_5(%arg0: i32) -> (i32, i32) {
    %c0_i32 = arith.constant 0 : i32
    %c0_i32_0 = arith.constant 0 : i32
    %c0_i32_1 = arith.constant 0 : i32
    return %c0_i32, %c0_i32_0 : i32, i32
  }
  func.func @transform_6(%arg0: i32) -> (i32, i32) {
    %c0_i32 = arith.constant 0 : i32
    %c0_i32_0 = arith.constant 0 : i32
    %c0_i32_1 = arith.constant 0 : i32
    return %c0_i32, %c0_i32_0 : i32, i32
  }
  func.func @transform_7(%arg0: i32) -> (i32, i32) {
    %c0_i32 = arith.constant 0 : i32
    %c0_i32_0 = arith.constant 0 : i32
    return %c0_i32, %arg0 : i32, i32
  }
}

</mosaic_0001>

<bundles_post_ra>
// kernel: tpu_custom_call.1
= control target key start
LH: loop header
LB: loop body
LE: loop exit
PB: predicated region body
PF: predicated region fallthrough
CT: control target
= control target key end

     0   :  { %vm74_vm0 = vcmask 1041408   ;;  %v271_v3 = vmov 0   ;;  %vm67_vm1 = vcmask 31744   ;;  %s364_s0 = inlined_call_operand.vmem [shape: bf16[4,128], index: 0, kind: input, shape index: {}]   ;;  %s365_s1 = inlined_call_operand.vmem [shape: bf16[32,4], index: 1, kind: input, shape index: {}]   ;;  %s366_s2 = inlined_call_operand.vmem [shape: f32[32,1], index: 2, kind: input, shape index: {}]   ;;  %s367_s3 = inlined_call_operand.vmem [shape: bf16[32,32], index: 3, kind: input, shape index: {}]   ;;  %s368_s4 = inlined_call_operand.vmem [shape: f32[32,1], index: 4, kind: input, shape index: {}]   ;;  %s369_s5 = inlined_call_operand.vmem [shape: bf16[3,32], index: 5, kind: input, shape index: {}]   ;;  %s370_s6 = inlined_call_operand.vmem [shape: f32[3,1], index: 6, kind: input, shape index: {}]   ;;  %s371_s7 = inlined_call_operand.hbm [shape: f32[3,128], index: 7, kind: output, shape index: {}]  }
   0x1   :  { %v28_v0 = vld [vmem:[%s364_s0] sm:$0x3]  ;;  %243 = vset.pattern.permute.xlu1 %v271_v3  ;;  %242 = vset.pattern.permute.xlu0 %v271_v3  ;;  %v35_v4 = vld [vmem:[%s366_s2 + $0x10] sm:$0xff] }
   0x2   :  { %v76_v1 = vsel %vm74_vm0, %v28_v0, 0  ;;  %v234_v2 = vld [vmem:[%s365_s1] sm:$0xff]  ;;  %49 = vperm.xlu0 %242, %v35_v4   ;;  %244 = vset.pattern.permute.xlu2 %v271_v3 }
   0x3   :  { %v33_v5 = vld [vmem:[%s366_s2] sm:$0xff]  ;;  %85 = vmatpush.bf16.msra.mxu0 %v76_v1 }
   0x4   :  { %39 = vperm.xlu1 %243, %v33_v5  }
   0x5   :  { %12 = vsyncpa [#allocation3], 0  ;;  %v36_v6 = vld [vmem:[%s366_s2 + $0x18] sm:$0xff]  ;;  %v34_v7 = vld [vmem:[%s366_s2 + $0x8] sm:$0xff]  ;;  %vm141_vm2 = vcmask 261120   ;;  %s272_s25 = smov [#allocation2]  }
   0x6   :  { %221 = vmatmul.msk.bf16.vlgmr.msra.gmra.mxu0 %vm67_vm1, %v234_v2  ;;  %v107_v8 = vld [vmem:[%s368_s4] sm:$0xff]  ;;  %v108_v9 = vld [vmem:[%s368_s4 + $0x8] sm:$0xff]  ;;  %v109_v12 = vld [vmem:[%s368_s4 + $0x10] sm:$0xff]  ;;  %s202_s26 = sshll.u32 %s272_s25, 4  ;;  %s204_s29 = sshll.u32 %s371_s7, 4  ;;  %s203_s26 = int_to_ptr.vmem [resolvable:$true] %s202_s26  ;;  %s205_s29 = int_to_ptr.hbm [resolvable:$true] %s204_s29 }
   0x7   :  { %v235_v10 = vld [vmem:[%s365_s1 + $0x8] sm:$0xff]  ;;  %123 = vperm.xlu2 %244, %v109_v12   ;;  %v110_v15 = vld [vmem:[%s368_s4 + $0x18] sm:$0xff]  ;;  %v174_v18 = vld [vmem:[%s370_s6] sm:$0x7] }
   0x8   :  { %v236_v32 = vld [vmem:[%s367_s3] sm:$0xff]  ;;  %v237_v33 = vld [vmem:[%s367_s3 + $0x8] sm:$0xff] }
   0x9   :  { %v171_v52 = vld [vmem:[%s369_s5] sm:$0x3] }
   0xa   :  { %54 = vperm.xlu0 %242, %v36_v6  }
   0xc   :  { %44 = vperm.xlu1 %243, %v34_v7  }
   0xf   :  { %128 = vperm.xlu2 %244, %v110_v15  }
  0x12   :  { %113 = vperm.xlu0 %242, %v107_v8  }
  0x14   :  { %118 = vperm.xlu1 %243, %v108_v9  }
  0x16   :  { %222 = vmatmul.msk.bf16.gmra.mxu0 %vm67_vm1, %v235_v10 }
  0x17   :  { %177 = vperm.xlu2 %244, %v174_v18  }
  0x61   :  { %v124_v35 = vpop.permute.xlu2 %123 }
  0x69   :  { %v129_v40 = vpop.permute.xlu2 %128 }
  0x71   :  { %v178_v53 = vpop.permute.xlu2 %177 }
  0x74   :  { %v50_v16 = vpop.permute.xlu0 %49 }
  0x76   :  { %v40_v14 = vpop.permute.xlu1 %39 }
  0x7c   :  { %v55_v21 = vpop.permute.xlu0 %54 }
  0x7e   :  { %v45_v19 = vpop.permute.xlu1 %44 }
  0x83   :  { %v87_v11 = vpop.f32.mrf.mxu0 }
  0x84   :  { %v88_v25 = vadd.f32 %v87_v11, %v40_v14  ;;  %v114_v44 = vpop.permute.xlu0 %113 }
  0x86   :  { %v97_v30 = vmax.f32 %v88_v25, 0.0  ;;  %v119_v38 = vpop.permute.xlu1 %118 }
  0x8b   :  { %v89_v13 = vpop.f32.mrf.mxu0 }
  0x8c   :  { %v90_v23 = vadd.f32 %v89_v13, %v45_v19 }
  0x8e   :  { %v98_v28 = vmax.f32 %v90_v23, 0.0 }
  0x90   :  { %v105_v31 = vpack.c.bf16 %v98_v28, %v97_v30 }
  0x93   :  { %v92_v17 = vpop.f32.mrf.mxu0 }
  0x94   :  { %v93_v20 = vadd.f32 %v92_v17, %v50_v16 }
  0x96   :  { %v99_v26 = vmax.f32 %v93_v20, 0.0 }
  0x9b   :  { %v94_v22 = vpop.f32.mrf.mxu0 }
  0x9c   :  { %v95_v24 = vadd.f32 %v94_v22, %v55_v21 }
  0x9e   :  { %v100_v27 = vmax.f32 %v95_v24, 0.0 }
  0xa0   :  { %v106_v29 = vpack.c.bf16 %v100_v27, %v99_v26 }
  0xa2   :  { %154 = vmatpush.bf16.msra.mxu1 %v106_v29  ;;  %238 = vmatpush.bf16.msra.mxu3 %v106_v29 }
  0xa6   :  { %155 = vmatpush.bf16.msra.mxu1 %v105_v31  ;;  %239 = vmatpush.bf16.msra.mxu3 %v105_v31 }
  0xa9   :  { %231 = vmatmul.msk.bf16.vlgmr.msra.gmra.mxu1 %vm141_vm2, %v236_v32  ;;  %232 = vmatmul.msk.bf16.vlgmr.msra.gmra.mxu3 %vm141_vm2, %v237_v33 }
 0x126   :  { %v157_v34 = vpop.f32.mrf.mxu1 }
 0x127   :  { %v158_v45 = vadd.f32 %v157_v34, %v114_v44 }
 0x129   :  { %v167_v50 = vmax.f32 %v158_v45, 0.0 }
 0x12c   :  { %v162_v36 = vpop.f32.mrf.mxu3 }
 0x12d   :  { %v163_v39 = vadd.f32 %v162_v36, %v124_v35 }
 0x12e   :  { %v159_v37 = vpop.f32.mrf.mxu1 }
 0x12f   :  { %v160_v42 = vadd.f32 %v159_v37, %v119_v38  ;;  %v169_v46 = vmax.f32 %v163_v39, 0.0 }
 0x131   :  { %v168_v48 = vmax.f32 %v160_v42, 0.0 }
 0x133   :  { %v172_v51 = vpack.c.bf16 %v168_v48, %v167_v50 }
 0x134   :  { %v164_v41 = vpop.f32.mrf.mxu3 }
 0x135   :  { %v165_v43 = vadd.f32 %v164_v41, %v129_v40 }
 0x137   :  { %v170_v47 = vmax.f32 %v165_v43, 0.0 }
 0x139   :  { %v173_v49 = vpack.c.bf16 %v170_v47, %v169_v46 }
 0x13b   :  { %189 = vmatpush.bf16.msra.mxu2 %v173_v49 }
 0x13f   :  { %190 = vmatpush.bf16.msra.mxu2 %v172_v51 }
 0x142   :  { %233 = vmatmul.msk.bf16.vlgmr.msra.gmra.mxu2 %vm141_vm2, %v171_v52 }
 0x1c5   :  { %v192_v54 = vpop.f32.mrf.mxu2 }
 0x1c6   :  { %v193_v55 = vadd.f32 %v192_v54, %v178_v53 }
 0x1c8   :  { %196 = vst [vmem:[#allocation2] sm:$0x7] %v193_v55 }
 0x1c9   :  { %207 = dma.vmem_to_hbm [thread:$0]  %s203_s26, 64, %s205_s29, [#allocation3]  }
 0x1cd   :  { %v194_v56 = vpop.f32.mrf.mxu2 }
 0x1ce   :  { %269 = dma.done.wait [#allocation3], 64  }
 0x1cf   :  { %270 = vsyncadd [#allocation3], 4294967232 }
 0x1d0   :  { %212 = vsyncpa [#allocation3], 1 }

</bundles_post_ra>
